<compile_context>
chip_gen: v7x
topology: tpu7x:2x2x1
jax: 0.10.0
libtpu: 0.0.40
codegen_flags: <defaults>
</compile_context>

<pallas_src>
import numpy as np
import jax
import jax.numpy as jnp
from jax.experimental import pallas as pl
from jax.experimental.pallas import tpu as pltpu

BLOCK_ROWS = 4096         # rows (lanes) per grid step; sweep 2048-8192 at large N
LANE = 128                # lane granularity


def _bf16_elementwise_ok():
    """bf16 VPU/EUP path exists on v6e (Trillium) and v7x; not on v4 / v5e / v5p."""
    try:
        kind = jax.devices()[0].device_kind.lower()
    except Exception:
        return False
    return ("v6" in kind) or ("v7" in kind) or ("tpu7" in kind)


# ----------------------------- parameter init ------------------------------

def init_coupling_flow_params(key, dim, n_layers, hidden_dims):
    """Deterministic synthetic init mirroring
    st.ContinuousAffineCoupling(latent_net=MLP(dim+1, hidden_dims, 2*dim),
                                time_net=TimeTanh(2*dim), mask=...)."""
    L = n_layers
    h = list(hidden_dims)
    keys = iter(jax.random.split(key, 8 + 2 * len(h)))

    def linear(k, fan_in, shape):
        bound = 1.0 / np.sqrt(fan_in)
        return jax.random.uniform(k, shape, jnp.float32, -bound, bound)

    # first MLP layer; split into x-part / t-part so the kernel avoids a concat
    w1 = linear(next(keys), dim + 1, (L, dim + 1, h[0]))
    params = {
        "w1x": w1[:, :dim, :],                       # (L, dim, H0)
        "w1t": w1[:, dim:, :],                       # (L, 1,   H0)
        "b1": linear(next(keys), dim + 1, (L, 1, h[0])),
        "w_mid": [],
        "b_mid": [],
    }
    for j in range(len(h) - 1):
        params["w_mid"].append(linear(next(keys), h[j], (L, h[j], h[j + 1])))
        params["b_mid"].append(linear(next(keys), h[j], (L, 1, h[j + 1])))

    # final MLP layer (2*dim outputs) split into the scale / shift heads
    w3 = linear(next(keys), h[-1], (L, h[-1], 2 * dim))
    b3 = linear(next(keys), h[-1], (L, 1, 2 * dim))
    params["w3s"], params["w3h"] = w3[:, :, :dim], w3[:, :, dim:]
    params["b3s"], params["b3h"] = b3[:, :, :dim], b3[:, :, dim:]

    # TimeTanh(2*dim): tanh(w * t), chunked into the scale / shift halves
    tw = 0.5 * jax.random.normal(next(keys), (L, 1, 2 * dim), jnp.float32)
    params["tws"], params["twh"] = tw[:, :, :dim], tw[:, :, dim:]

    # masks: 'none' if dim == 1 else ordered_{i % 2} (used only by the reference)
    masks = np.zeros((L, 1, dim), np.float32)
    if dim > 1:
        for i in range(L):
            if i % 2 == 0:
                masks[i, 0, : dim // 2] = 1.0
            else:
                masks[i, 0, dim // 2:] = 1.0
    params["mask"] = jnp.asarray(masks)
    return params


def _prepare_kernel_params(params, dim, n_layers, use_bf16):
    """Transposed (rows-on-lanes) weights, pre-sliced to the static mask halves.

    Part convention (must match the kernel): part 0 = dims [0, dim//2),
    part 1 = dims [dim//2, dim).  Even layer: identity = part 0, transformed = part 1;
    odd layer: the opposite.  dim == 1: no identity part.
    """
    mdt = jnp.bfloat16 if use_bf16 else jnp.float32   # matmul-operand / activation dtype
    H0 = params["b1"].shape[-1]
    n_mid = len(params["w_mid"])
    hd = dim // 2

    # Fused [w1t | b1] for all layers -> a single (L*H0, 2) @ [t; 1] matmul per pass.
    w1tb = jnp.stack([params["w1t"][:, 0, :], params["b1"][:, 0, :]], axis=-1)
    flat = [w1tb.reshape(n_layers * H0, 2).astype(jnp.float32)]

    for l in range(n_layers):
        if dim > 1:
            if l % 2 == 0:
                id_lo, d_id, tr_lo, d_tr = 0, hd, hd, dim - hd
            else:
                id_lo, d_id, tr_lo, d_tr = hd, dim - hd, 0, hd
        else:
            id_lo, d_id, tr_lo, d_tr = 0, 0, 0, 1

        if d_id > 0:   # first-layer weight columns for the identity (masked-in) dims
            flat.append(jnp.transpose(
                params["w1x"][l, id_lo:id_lo + d_id, :]).astype(mdt))          # (H0, d_id)
        for j in range(n_mid):
            flat.append(jnp.transpose(params["w_mid"][j][l]).astype(mdt))      # (Hj+1, Hj)
            flat.append(jnp.transpose(params["b_mid"][j][l]).astype(jnp.float32))  # (Hj+1, 1)

        tr = slice(tr_lo, tr_lo + d_tr)
        w3tr = jnp.concatenate([jnp.transpose(params["w3s"][l][:, tr]),
                                jnp.transpose(params["w3h"][l][:, tr])],
                               axis=0).astype(mdt)                              # (2*d_tr, Hlast)
        b3tr = jnp.transpose(jnp.concatenate([params["b3s"][l][:, tr],
                                              params["b3h"][l][:, tr]],
                                             axis=-1)).astype(jnp.float32)      # (2*d_tr, 1)
        twtr = jnp.transpose(jnp.concatenate([params["tws"][l][:, tr],
                                              params["twh"][l][:, tr]],
                                             axis=-1)).astype(jnp.float32)      # (2*d_tr, 1)
        flat += [w3tr, b3tr, twtr]
    return flat, H0, n_mid


# ------------------------------ Pallas kernel -------------------------------

def _make_flow_kernel(dim, h0, n_layers, n_mid, with_t0, act_dt):
    """Kernel on transposed tiles: x^T (D, BR), t_aug^T (2, BR) = [t; 1].
    Runs (optionally) the inverse flow at t0 then the forward flow at t, fused."""
    hd = dim // 2
    has_id = dim > 1

    def kernel(*refs):
        i = 0
        x_ref = refs[i]; i += 1
        t_ref = refs[i]; i += 1                      # (2, BR): row0 = t, row1 = 1
        t0_ref = None
        if with_t0:
            t0_ref = refs[i]; i += 1                 # (2, BR): row0 = t0, row1 = 1
        w1tb = refs[i][...]; i += 1                  # (L*H0, 2) f32
        layers = []
        for _ in range(n_layers):
            lw = {}
            if has_id:
                lw["w1a"] = refs[i][...]; i += 1     # (H0, d_id)
            lw["mids"] = []
            for _ in range(n_mid):
                lw["mids"].append((refs[i][...], refs[i + 1][...]))
                i += 2
            lw["w3"], lw["b3"], lw["tw"] = refs[i][...], refs[i + 1][...], refs[i + 2][...]
            i += 3
            layers.append(lw)
        o_ref = refs[i]

        x = x_ref[...].astype(jnp.float32)           # (D, BR)
        if has_id:
            parts = [x[:hd], x[hd:]]                 # part 0 = dims [0,hd), part 1 = [hd,dim)
        else:
            parts = [x]

        def run_pass(parts, t_aug, reverse):
            tcol = t_aug[0:1]                                                    # (1, BR)
            # Every layer's first-layer (w1t*t + b1) contribution via one MXU matmul.
            tb_all = jnp.dot(w1tb, t_aug, preferred_element_type=jnp.float32)    # (L*H0, BR)
            order = range(n_layers - 1, -1, -1) if reverse else range(n_layers)
            for l in order:                                                      # static unroll
                lw = layers[l]
                if has_id:
                    id_idx = 0 if (l % 2 == 0) else 1
                    tr_idx = 1 - id_idx
                else:
                    id_idx, tr_idx = None, 0
                pre = tb_all[l * h0:(l + 1) * h0]                                # (H0, BR)
                if id_idx is not None:
                    pre = pre + jnp.dot(lw["w1a"], parts[id_idx].astype(act_dt),
                                        preferred_element_type=jnp.float32)
                h = jnp.tanh(pre.astype(act_dt))
                for wm, bm in lw["mids"]:
                    h = jnp.tanh((jnp.dot(wm, h, preferred_element_type=jnp.float32)
                                  + bm).astype(act_dt))
                # fused scale/shift head + fused time-net, restricted to the transformed half
                sh = jnp.dot(lw["w3"], h, preferred_element_type=jnp.float32) + lw["b3"]
                tn = jnp.tanh(lw["tw"] * tcol)                                   # (2*d_tr, BR)
                d_tr = parts[tr_idx].shape[0]
                scale, shift = sh[:d_tr], sh[d_tr:]
                tn1, tn2 = tn[:d_tr], tn[d_tr:]
                x_tr = parts[tr_idx]
                if reverse:
                    parts[tr_idx] = (x_tr - shift * tn2) * jnp.exp(-scale * tn1)
                else:
                    parts[tr_idx] = x_tr * jnp.exp(scale * tn1) + shift * tn2
            return parts

        if with_t0:
            parts = run_pass(parts, t0_ref[...].astype(jnp.float32), True)   # inverse at t0
        parts = run_pass(parts, t_ref[...].astype(jnp.float32), False)       # forward at t

        if has_id:
            # static sub-slice stores; no mask blend / concat needed
            o_ref[pl.ds(0, hd), :] = parts[0].astype(o_ref.dtype)
            o_ref[pl.ds(hd, dim - hd), :] = parts[1].astype(o_ref.dtype)
        else:
            o_ref[...] = parts[0].astype(o_ref.dtype)

    return kernel


def _run_flow_pallas(params, xT, tT_aug, t0T_aug, *, n_layers):
    """xT: (D, N), tT_aug / t0T_aug: (2, N) = [t; 1].  Returns (D, N)."""
    D, N = xT.shape
    use_bf16 = _bf16_elementwise_ok()
    act_dt = jnp.bfloat16 if use_bf16 else jnp.float32
    flat_params, H0, n_mid = _prepare_kernel_params(params, D, n_layers, use_bf16)
    with_t0 = t0T_aug is not None

    # Rows go on lanes.  Cap the block at ~N/2 (lane-rounded) so there are always
    # >= 2 grid steps when possible -> both TensorCores get work on v7x megacore.
    n128 = pl.cdiv(N, LANE) * LANE
    if n128 >= 2 * LANE:
        block_rows = min(BLOCK_ROWS, pl.cdiv(n128, 2 * LANE) * LANE)
    else:
        block_rows = n128
    n_pad = pl.cdiv(N, block_rows) * block_rows
    pad = n_pad - N

    data_in = [jnp.pad(xT, ((0, 0), (0, pad))),
               jnp.pad(tT_aug, ((0, 0), (0, pad)))]
    if with_t0:
        data_in.append(jnp.pad(t0T_aug, ((0, 0), (0, pad))))

    kernel = _make_flow_kernel(D, H0, n_layers, n_mid, with_t0, act_dt)

    in_specs = [pl.BlockSpec((D, block_rows), lambda i: (0, i)),
                pl.BlockSpec((2, block_rows), lambda i: (0, i))]
    if with_t0:
        in_specs.append(pl.BlockSpec((2, block_rows), lambda i: (0, i)))
    # Parameters: full block, constant index_map -> fetched once, broadcast across the grid.
    for a in flat_params:
        in_specs.append(pl.BlockSpec(a.shape, lambda i, nd=a.ndim: (0,) * nd))

    outT = pl.pallas_call(
        kernel,
        out_shape=jax.ShapeDtypeStruct((D, n_pad), xT.dtype),
        grid_spec=pltpu.PrefetchScalarGridSpec(
            num_scalar_prefetch=0,
            grid=(n_pad // block_rows,),
            in_specs=in_specs,
            out_specs=pl.BlockSpec((D, block_rows), lambda i: (0, i)),
        ),
        compiler_params=pltpu.CompilerParams(
            dimension_semantics=("parallel",),      # shards blocks across TCs on v7x
            vmem_limit_bytes=32 * 1024 * 1024,      # safe on v5e/v6e/v7x (<= 64 MiB phys)
        ),
    )(*data_in, *flat_params)

    return outT[:, :N]                              # (D, N)


# ------------------------- CouplingFlow.forward -----------------------------

def coupling_flow_forward(params, x, t, t0=None, *, n_layers):
    """Matches CouplingFlow.forward(x, t, t0)."""
    B, S, _ = t.shape
    D = x.shape[-1]
    N = B * S
    if x.shape[-2] == 1:
        # Single-state case: build x^T directly with one fused transpose+repeat
        # (keeps the repeat lazy; no (B, S, D) materialization before the transpose).
        xT = jnp.repeat(jnp.transpose(x[:, 0, :]), S, axis=1)          # (D, N)
    else:
        xT = jnp.transpose(x.reshape(N, D))                            # (D, N)
    ones = jnp.ones((1, N), x.dtype)
    tT_aug = jnp.concatenate([jnp.transpose(t.reshape(N, 1)), ones], axis=0)       # (2, N)
    t0T_aug = None
    if t0 is not None:
        t0T_aug = jnp.concatenate([jnp.transpose(t0.reshape(N, 1)), ones], axis=0)  # (2, N)
    yT = _run_flow_pallas(params, xT, tT_aug, t0T_aug, n_layers=n_layers)
    # TODO(synk): a consumer that accepts the (D, N) layout could skip this final transpose.
    return jnp.transpose(yT).reshape(B, S, D)


# ----------------------- pure-JAX reference (check) -------------------------

def coupling_flow_reference(params, x, t, t0=None, *, n_layers):
    B, S, _ = t.shape
    if x.shape[-2] == 1:
        x = jnp.repeat(x, S, axis=-2)

    def apply(x, tt, reverse):
        order = range(n_layers - 1, -1, -1) if reverse else range(n_layers)
        for l in order:
            m = params["mask"][l]
            h = jnp.tanh((x * m) @ params["w1x"][l] + tt * params["w1t"][l] + params["b1"][l])
            for wm, bm in zip(params["w_mid"], params["b_mid"]):
                h = jnp.tanh(h @ wm[l] + bm[l])
            scale = h @ params["w3s"][l] + params["b3s"][l]
            shift = h @ params["w3h"][l] + params["b3h"][l]
            tn1 = jnp.tanh(tt * params["tws"][l])
            tn2 = jnp.tanh(tt * params["twh"][l])
            if reverse:
                y = (x - shift * tn2) * jnp.exp(-scale * tn1)
            else:
                y = x * jnp.exp(scale * tn1) + shift * tn2
            x = m * x + (1.0 - m) * y
        return x

    if t0 is not None:
        x = apply(x, t0, True)
    return apply(x, t, False)


# ---------------------------------- main ------------------------------------

if __name__ == "__main__":
    dim, n_layers, hidden_dims = 4, 2, [32, 32]

    key = jax.random.PRNGKey(0)
    kp, kx, kt, k0, kx2, kt2, k02 = jax.random.split(key, 7)
    params = init_coupling_flow_params(kp, dim, n_layers, hidden_dims)

    use_bf16 = _bf16_elementwise_ok()
    tol = 1e-2 if use_bf16 else 2e-3     # bf16 conditioner path (v6e/v7x) is looser

    # Small single-state case (x repeated over seq), with and without t0.
    B, S = 2, 8
    x = jax.random.normal(kx, (B, 1, dim), jnp.float32)
    t = jax.random.uniform(kt, (B, S, 1), jnp.float32)
    t0 = jax.random.uniform(k0, (B, S, 1), jnp.float32)

    y = jax.block_until_ready(coupling_flow_forward(params, x, t, n_layers=n_layers))
    assert y.shape == (B, S, dim)
    y_ref = coupling_flow_reference(params, x, t, n_layers=n_layers)
    np.testing.assert_allclose(np.asarray(y), np.asarray(y_ref), rtol=tol, atol=tol)

    y2 = jax.block_until_ready(coupling_flow_forward(params, x, t, t0, n_layers=n_layers))
    y2_ref = coupling_flow_reference(params, x, t, t0, n_layers=n_layers)
    np.testing.assert_allclose(np.asarray(y2), np.asarray(y2_ref), rtol=tol, atol=tol)

    # Medium case with a full (B, S, D) state -> exercises the >= 2-grid-step path.
    B2, S2 = 4, 64
    x2 = jax.random.normal(kx2, (B2, S2, dim), jnp.float32)
    t2 = jax.random.uniform(kt2, (B2, S2, 1), jnp.float32)
    t02 = jax.random.uniform(k02, (B2, S2, 1), jnp.float32)
    y3 = jax.block_until_ready(coupling_flow_forward(params, x2, t2, t02, n_layers=n_layers))
    y3_ref = coupling_flow_reference(params, x2, t2, t02, n_layers=n_layers)
    np.testing.assert_allclose(np.asarray(y3), np.asarray(y3_ref), rtol=tol, atol=tol)

    print("KERNEL_OK")
</pallas_src>

<mosaic_0001>
module attributes {stable_mosaic.version = 11 : i64} {
  func.func @kernel(%arg0: i32, %arg1: memref<4x128xf32, #tpu.memory_space<vmem>>, %arg2: memref<2x128xf32, #tpu.memory_space<vmem>>, %arg3: memref<64x2xf32, #tpu.memory_space<vmem>>, %arg4: memref<32x2xf32, #tpu.memory_space<vmem>>, %arg5: memref<32x32xf32, #tpu.memory_space<vmem>>, %arg6: memref<32x1xf32, #tpu.memory_space<vmem>>, %arg7: memref<4x32xf32, #tpu.memory_space<vmem>>, %arg8: memref<4x1xf32, #tpu.memory_space<vmem>>, %arg9: memref<4x1xf32, #tpu.memory_space<vmem>>, %arg10: memref<32x2xf32, #tpu.memory_space<vmem>>, %arg11: memref<32x32xf32, #tpu.memory_space<vmem>>, %arg12: memref<32x1xf32, #tpu.memory_space<vmem>>, %arg13: memref<4x32xf32, #tpu.memory_space<vmem>>, %arg14: memref<4x1xf32, #tpu.memory_space<vmem>>, %arg15: memref<4x1xf32, #tpu.memory_space<vmem>>, %arg16: memref<4x128xf32, #tpu.memory_space<vmem>>) attributes {dimension_semantics = [#tpu.dimension_semantics<parallel>], iteration_bounds = array<i64: 1>, scalar_prefetch = 0 : i64, scratch_operands = 0 : i64, tpu.core_type = #tpu.core_type<tc>, window_params = [{transform_indices = @transform_0, window_bounds = array<i64: 4, 128>}, {transform_indices = @transform_1, window_bounds = array<i64: 2, 128>}, {pipeline_mode = #tpu.pipeline_mode<synchronous>, transform_indices = @transform_2, window_bounds = array<i64: 64, 2>}, {pipeline_mode = #tpu.pipeline_mode<synchronous>, transform_indices = @transform_3, window_bounds = array<i64: 32, 2>}, {pipeline_mode = #tpu.pipeline_mode<synchronous>, transform_indices = @transform_4, window_bounds = array<i64: 32, 32>}, {pipeline_mode = #tpu.pipeline_mode<synchronous>, transform_indices = @transform_5, window_bounds = array<i64: 32, 1>}, {pipeline_mode = #tpu.pipeline_mode<synchronous>, transform_indices = @transform_6, window_bounds = array<i64: 4, 32>}, {pipeline_mode = #tpu.pipeline_mode<synchronous>, transform_indices = @transform_7, window_bounds = array<i64: 4, 1>}, {pipeline_mode = #tpu.pipeline_mode<synchronous>, transform_indices = @transform_8, window_bounds = array<i64: 4, 1>}, {pipeline_mode = #tpu.pipeline_mode<synchronous>, transform_indices = @transform_9, window_bounds = array<i64: 32, 2>}, {pipeline_mode = #tpu.pipeline_mode<synchronous>, transform_indices = @transform_10, window_bounds = array<i64: 32, 32>}, {pipeline_mode = #tpu.pipeline_mode<synchronous>, transform_indices = @transform_11, window_bounds = array<i64: 32, 1>}, {pipeline_mode = #tpu.pipeline_mode<synchronous>, transform_indices = @transform_12, window_bounds = array<i64: 4, 32>}, {pipeline_mode = #tpu.pipeline_mode<synchronous>, transform_indices = @transform_13, window_bounds = array<i64: 4, 1>}, {pipeline_mode = #tpu.pipeline_mode<synchronous>, transform_indices = @transform_14, window_bounds = array<i64: 4, 1>}, {transform_indices = @transform_15, window_bounds = array<i64: 4, 128>}]} {
    %c0 = arith.constant 0 : index
    %c0_0 = arith.constant 0 : index
    %0 = vector.load %arg3[%c0, %c0_0] : memref<64x2xf32, #tpu.memory_space<vmem>>, vector<64x2xf32>
    %c0_1 = arith.constant 0 : index
    %c0_2 = arith.constant 0 : index
    %1 = vector.load %arg4[%c0_1, %c0_2] : memref<32x2xf32, #tpu.memory_space<vmem>>, vector<32x2xf32>
    %c0_3 = arith.constant 0 : index
    %c0_4 = arith.constant 0 : index
    %2 = vector.load %arg5[%c0_3, %c0_4] : memref<32x32xf32, #tpu.memory_space<vmem>>, vector<32x32xf32>
    %c0_5 = arith.constant 0 : index
    %c0_6 = arith.constant 0 : index
    %3 = vector.load %arg6[%c0_5, %c0_6] : memref<32x1xf32, #tpu.memory_space<vmem>>, vector<32x1xf32>
    %c0_7 = arith.constant 0 : index
    %c0_8 = arith.constant 0 : index
    %4 = vector.load %arg7[%c0_7, %c0_8] : memref<4x32xf32, #tpu.memory_space<vmem>>, vector<4x32xf32>
    %c0_9 = arith.constant 0 : index
    %c0_10 = arith.constant 0 : index
    %5 = vector.load %arg8[%c0_9, %c0_10] : memref<4x1xf32, #tpu.memory_space<vmem>>, vector<4x1xf32>
    %c0_11 = arith.constant 0 : index
    %c0_12 = arith.constant 0 : index
    %6 = vector.load %arg9[%c0_11, %c0_12] : memref<4x1xf32, #tpu.memory_space<vmem>>, vector<4x1xf32>
    %c0_13 = arith.constant 0 : index
    %c0_14 = arith.constant 0 : index
    %7 = vector.load %arg10[%c0_13, %c0_14] : memref<32x2xf32, #tpu.memory_space<vmem>>, vector<32x2xf32>
    %c0_15 = arith.constant 0 : index
    %c0_16 = arith.constant 0 : index
    %8 = vector.load %arg11[%c0_15, %c0_16] : memref<32x32xf32, #tpu.memory_space<vmem>>, vector<32x32xf32>
    %c0_17 = arith.constant 0 : index
    %c0_18 = arith.constant 0 : index
    %9 = vector.load %arg12[%c0_17, %c0_18] : memref<32x1xf32, #tpu.memory_space<vmem>>, vector<32x1xf32>
    %c0_19 = arith.constant 0 : index
    %c0_20 = arith.constant 0 : index
    %10 = vector.load %arg13[%c0_19, %c0_20] : memref<4x32xf32, #tpu.memory_space<vmem>>, vector<4x32xf32>
    %c0_21 = arith.constant 0 : index
    %c0_22 = arith.constant 0 : index
    %11 = vector.load %arg14[%c0_21, %c0_22] : memref<4x1xf32, #tpu.memory_space<vmem>>, vector<4x1xf32>
    %c0_23 = arith.constant 0 : index
    %c0_24 = arith.constant 0 : index
    %12 = vector.load %arg15[%c0_23, %c0_24] : memref<4x1xf32, #tpu.memory_space<vmem>>, vector<4x1xf32>
    %c0_25 = arith.constant 0 : index
    %c0_26 = arith.constant 0 : index
    %13 = vector.load %arg1[%c0_25, %c0_26] : memref<4x128xf32, #tpu.memory_space<vmem>>, vector<4x128xf32>
    %14 = vector.extract_strided_slice %13 {offsets = [0, 0], sizes = [2, 128], strides = [1, 1]} : vector<4x128xf32> to vector<2x128xf32>
    %15 = vector.extract_strided_slice %13 {offsets = [2, 0], sizes = [2, 128], strides = [1, 1]} : vector<4x128xf32> to vector<2x128xf32>
    %c0_27 = arith.constant 0 : index
    %c0_28 = arith.constant 0 : index
    %16 = vector.load %arg2[%c0_27, %c0_28] : memref<2x128xf32, #tpu.memory_space<vmem>>, vector<2x128xf32>
    %17 = vector.extract_strided_slice %16 {offsets = [0, 0], sizes = [1, 128], strides = [1, 1]} : vector<2x128xf32> to vector<1x128xf32>
    %cst = arith.constant dense<0.000000e+00> : vector<64x128xf32>
    %18 = tpu.matmul %0, %16, %cst {dimension_numbers = #tpu.dot_dimension_numbers<[1], [0], [0], [1], [0, 0, 1, 1], [], []>} : vector<64x2xf32>, vector<2x128xf32>, vector<64x128xf32> -> vector<64x128xf32>
    %19 = vector.extract_strided_slice %18 {offsets = [0, 0], sizes = [32, 128], strides = [1, 1]} : vector<64x128xf32> to vector<32x128xf32>
    %cst_29 = arith.constant dense<0.000000e+00> : vector<32x128xf32>
    %20 = tpu.matmul %1, %14, %cst_29 {dimension_numbers = #tpu.dot_dimension_numbers<[1], [0], [0], [1], [0, 0, 1, 1], [], []>} : vector<32x2xf32>, vector<2x128xf32>, vector<32x128xf32> -> vector<32x128xf32>
    %21 = arith.addf %19, %20 : vector<32x128xf32>
    %22 = math.tanh %21 : vector<32x128xf32>
    %cst_30 = arith.constant dense<0.000000e+00> : vector<32x128xf32>
    %23 = tpu.matmul %2, %22, %cst_30 {dimension_numbers = #tpu.dot_dimension_numbers<[1], [0], [0], [1], [0, 0, 1, 1], [], []>} : vector<32x32xf32>, vector<32x128xf32>, vector<32x128xf32> -> vector<32x128xf32>
    %24 = vector.broadcast %3 : vector<32x1xf32> to vector<32x128xf32>
    %25 = arith.addf %23, %24 : vector<32x128xf32>
    %26 = math.tanh %25 : vector<32x128xf32>
    %cst_31 = arith.constant dense<0.000000e+00> : vector<4x128xf32>
    %27 = tpu.matmul %4, %26, %cst_31 {dimension_numbers = #tpu.dot_dimension_numbers<[1], [0], [0], [1], [0, 0, 1, 1], [], []>} : vector<4x32xf32>, vector<32x128xf32>, vector<4x128xf32> -> vector<4x128xf32>
    %28 = vector.broadcast %5 : vector<4x1xf32> to vector<4x128xf32>
    %29 = arith.addf %27, %28 : vector<4x128xf32>
    %30 = vector.broadcast %6 : vector<4x1xf32> to vector<4x128xf32>
    %31 = vector.broadcast %17 : vector<1x128xf32> to vector<4x128xf32>
    %32 = arith.mulf %30, %31 : vector<4x128xf32>
    %33 = math.tanh %32 : vector<4x128xf32>
    %34 = vector.extract_strided_slice %29 {offsets = [0, 0], sizes = [2, 128], strides = [1, 1]} : vector<4x128xf32> to vector<2x128xf32>
    %35 = vector.extract_strided_slice %29 {offsets = [2, 0], sizes = [2, 128], strides = [1, 1]} : vector<4x128xf32> to vector<2x128xf32>
    %36 = vector.extract_strided_slice %33 {offsets = [0, 0], sizes = [2, 128], strides = [1, 1]} : vector<4x128xf32> to vector<2x128xf32>
    %37 = vector.extract_strided_slice %33 {offsets = [2, 0], sizes = [2, 128], strides = [1, 1]} : vector<4x128xf32> to vector<2x128xf32>
    %38 = arith.mulf %34, %36 : vector<2x128xf32>
    %39 = math.exp %38 : vector<2x128xf32>
    %40 = arith.mulf %15, %39 : vector<2x128xf32>
    %41 = arith.mulf %35, %37 : vector<2x128xf32>
    %42 = arith.addf %40, %41 : vector<2x128xf32>
    %43 = vector.extract_strided_slice %18 {offsets = [32, 0], sizes = [32, 128], strides = [1, 1]} : vector<64x128xf32> to vector<32x128xf32>
    %cst_32 = arith.constant dense<0.000000e+00> : vector<32x128xf32>
    %44 = tpu.matmul %7, %42, %cst_32 {dimension_numbers = #tpu.dot_dimension_numbers<[1], [0], [0], [1], [0, 0, 1, 1], [], []>} : vector<32x2xf32>, vector<2x128xf32>, vector<32x128xf32> -> vector<32x128xf32>
    %45 = arith.addf %43, %44 : vector<32x128xf32>
    %46 = math.tanh %45 : vector<32x128xf32>
    %cst_33 = arith.constant dense<0.000000e+00> : vector<32x128xf32>
    %47 = tpu.matmul %8, %46, %cst_33 {dimension_numbers = #tpu.dot_dimension_numbers<[1], [0], [0], [1], [0, 0, 1, 1], [], []>} : vector<32x32xf32>, vector<32x128xf32>, vector<32x128xf32> -> vector<32x128xf32>
    %48 = vector.broadcast %9 : vector<32x1xf32> to vector<32x128xf32>
    %49 = arith.addf %47, %48 : vector<32x128xf32>
    %50 = math.tanh %49 : vector<32x128xf32>
    %cst_34 = arith.constant dense<0.000000e+00> : vector<4x128xf32>
    %51 = tpu.matmul %10, %50, %cst_34 {dimension_numbers = #tpu.dot_dimension_numbers<[1], [0], [0], [1], [0, 0, 1, 1], [], []>} : vector<4x32xf32>, vector<32x128xf32>, vector<4x128xf32> -> vector<4x128xf32>
    %52 = vector.broadcast %11 : vector<4x1xf32> to vector<4x128xf32>
    %53 = arith.addf %51, %52 : vector<4x128xf32>
    %54 = vector.broadcast %12 : vector<4x1xf32> to vector<4x128xf32>
    %55 = vector.broadcast %17 : vector<1x128xf32> to vector<4x128xf32>
    %56 = arith.mulf %54, %55 : vector<4x128xf32>
    %57 = math.tanh %56 : vector<4x128xf32>
    %58 = vector.extract_strided_slice %53 {offsets = [0, 0], sizes = [2, 128], strides = [1, 1]} : vector<4x128xf32> to vector<2x128xf32>
    %59 = vector.extract_strided_slice %53 {offsets = [2, 0], sizes = [2, 128], strides = [1, 1]} : vector<4x128xf32> to vector<2x128xf32>
    %60 = vector.extract_strided_slice %57 {offsets = [0, 0], sizes = [2, 128], strides = [1, 1]} : vector<4x128xf32> to vector<2x128xf32>
    %61 = vector.extract_strided_slice %57 {offsets = [2, 0], sizes = [2, 128], strides = [1, 1]} : vector<4x128xf32> to vector<2x128xf32>
    %62 = arith.mulf %58, %60 : vector<2x128xf32>
    %63 = math.exp %62 : vector<2x128xf32>
    %64 = arith.mulf %14, %63 : vector<2x128xf32>
    %65 = arith.mulf %59, %61 : vector<2x128xf32>
    %66 = arith.addf %64, %65 : vector<2x128xf32>
    %c0_35 = arith.constant 0 : index
    %c0_36 = arith.constant 0 : index
    %67 = vector.load %arg16[%c0_35, %c0_36] : memref<4x128xf32, #tpu.memory_space<vmem>>, vector<2x128xf32>
    tpu.vector_store %arg16[%c0_35, %c0_36], %66 {strides = array<i32>} : memref<4x128xf32, #tpu.memory_space<vmem>>, vector<2x128xf32>,
    %c2 = arith.constant 2 : index
    %c0_37 = arith.constant 0 : index
    %68 = vector.load %arg16[%c2, %c0_37] : memref<4x128xf32, #tpu.memory_space<vmem>>, vector<2x128xf32>
    tpu.vector_store %arg16[%c2, %c0_37], %42 {strides = array<i32>} : memref<4x128xf32, #tpu.memory_space<vmem>>, vector<2x128xf32>,
    return
  }
  func.func @transform_0(%arg0: i32) -> (i32, i32) {
    %c0_i32 = arith.constant 0 : i32
    %c0_i32_0 = arith.constant 0 : i32
    return %c0_i32, %arg0 : i32, i32
  }
  func.func @transform_1(%arg0: i32) -> (i32, i32) {
    %c0_i32 = arith.constant 0 : i32
    %c0_i32_0 = arith.constant 0 : i32
    return %c0_i32, %arg0 : i32, i32
  }
  func.func @transform_2(%arg0: i32) -> (i32, i32) {
    %c0_i32 = arith.constant 0 : i32
    %c0_i32_0 = arith.constant 0 : i32
    %c0_i32_1 = arith.constant 0 : i32
    return %c0_i32, %c0_i32_0 : i32, i32
  }
  func.func @transform_3(%arg0: i32) -> (i32, i32) {
    %c0_i32 = arith.constant 0 : i32
    %c0_i32_0 = arith.constant 0 : i32
    %c0_i32_1 = arith.constant 0 : i32
    return %c0_i32, %c0_i32_0 : i32, i32
  }
  func.func @transform_4(%arg0: i32) -> (i32, i32) {
    %c0_i32 = arith.constant 0 : i32
    %c0_i32_0 = arith.constant 0 : i32
    %c0_i32_1 = arith.constant 0 : i32
    return %c0_i32, %c0_i32_0 : i32, i32
  }
  func.func @transform_5(%arg0: i32) -> (i32, i32) {
    %c0_i32 = arith.constant 0 : i32
    %c0_i32_0 = arith.constant 0 : i32
    %c0_i32_1 = arith.constant 0 : i32
    return %c0_i32, %c0_i32_0 : i32, i32
  }
  func.func @transform_6(%arg0: i32) -> (i32, i32) {
    %c0_i32 = arith.constant 0 : i32
    %c0_i32_0 = arith.constant 0 : i32
    %c0_i32_1 = arith.constant 0 : i32
    return %c0_i32, %c0_i32_0 : i32, i32
  }
  func.func @transform_7(%arg0: i32) -> (i32, i32) {
    %c0_i32 = arith.constant 0 : i32
    %c0_i32_0 = arith.constant 0 : i32
    %c0_i32_1 = arith.constant 0 : i32
    return %c0_i32, %c0_i32_0 : i32, i32
  }
  func.func @transform_8(%arg0: i32) -> (i32, i32) {
    %c0_i32 = arith.constant 0 : i32
    %c0_i32_0 = arith.constant 0 : i32
    %c0_i32_1 = arith.constant 0 : i32
    return %c0_i32, %c0_i32_0 : i32, i32
  }
  func.func @transform_9(%arg0: i32) -> (i32, i32) {
    %c0_i32 = arith.constant 0 : i32
    %c0_i32_0 = arith.constant 0 : i32
    %c0_i32_1 = arith.constant 0 : i32
    return %c0_i32, %c0_i32_0 : i32, i32
  }
  func.func @transform_10(%arg0: i32) -> (i32, i32) {
    %c0_i32 = arith.constant 0 : i32
    %c0_i32_0 = arith.constant 0 : i32
    %c0_i32_1 = arith.constant 0 : i32
    return %c0_i32, %c0_i32_0 : i32, i32
  }
  func.func @transform_11(%arg0: i32) -> (i32, i32) {
    %c0_i32 = arith.constant 0 : i32
    %c0_i32_0 = arith.constant 0 : i32
    %c0_i32_1 = arith.constant 0 : i32
    return %c0_i32, %c0_i32_0 : i32, i32
  }
  func.func @transform_12(%arg0: i32) -> (i32, i32) {
    %c0_i32 = arith.constant 0 : i32
    %c0_i32_0 = arith.constant 0 : i32
    %c0_i32_1 = arith.constant 0 : i32
    return %c0_i32, %c0_i32_0 : i32, i32
  }
  func.func @transform_13(%arg0: i32) -> (i32, i32) {
    %c0_i32 = arith.constant 0 : i32
    %c0_i32_0 = arith.constant 0 : i32
    %c0_i32_1 = arith.constant 0 : i32
    return %c0_i32, %c0_i32_0 : i32, i32
  }
  func.func @transform_14(%arg0: i32) -> (i32, i32) {
    %c0_i32 = arith.constant 0 : i32
    %c0_i32_0 = arith.constant 0 : i32
    %c0_i32_1 = arith.constant 0 : i32
    return %c0_i32, %c0_i32_0 : i32, i32
  }
  func.func @transform_15(%arg0: i32) -> (i32, i32) {
    %c0_i32 = arith.constant 0 : i32
    %c0_i32_0 = arith.constant 0 : i32
    return %c0_i32, %arg0 : i32, i32
  }
}

</mosaic_0001>

<bundles_post_ra>
// kernel: tpu_custom_call.1
= control target key start
LH: loop header
LB: loop body
LE: loop exit
PB: predicated region body
PF: predicated region fallthrough
CT: control target
= control target key end

     0   :  { %vm116_vm0 = vcmask 1041408   ;;  %vm91_vm1 = vcmask 15360   ;;  %s1424_s0 = inlined_call_operand.vmem [shape: f32[4,128], index: 0, kind: input, shape index: {}]   ;;  %s1425_s1 = inlined_call_operand.vmem [shape: f32[2,128], index: 1, kind: input, shape index: {}]   ;;  %s1426_s2 = inlined_call_operand.vmem [shape: f32[64,2], index: 2, kind: input, shape index: {}]   ;;  %s1427_s3 = inlined_call_operand.vmem [shape: f32[32,2], index: 3, kind: input, shape index: {}]   ;;  %s1428_s4 = inlined_call_operand.vmem [shape: f32[32,32], index: 4, kind: input, shape index: {}]   ;;  %s1429_s5 = inlined_call_operand.vmem [shape: f32[32,1], index: 5, kind: input, shape index: {}]   ;;  %s1430_s6 = inlined_call_operand.vmem [shape: f32[4,32], index: 6, kind: input, shape index: {}]   ;;  %s1431_s7 = inlined_call_operand.vmem [shape: f32[4,1], index: 7, kind: input, shape index: {}]   ;;  %s1432_s8 = inlined_call_operand.vmem [shape: f32[4,1], index: 8, kind: input, shape index: {}]   ;;  %s1433_s9 = inlined_call_operand.vmem [shape: f32[32,2], index: 9, kind: input, shape index: {}]   ;;  %s1434_s10 = inlined_call_operand.vmem [shape: f32[32,32], index: 10, kind: input, shape index: {}]   ;;  %s1435_s11 = inlined_call_operand.vmem [shape: f32[32,1], index: 11, kind: input, shape index: {}]   ;;  %s1436_s12 = inlined_call_operand.vmem [shape: f32[4,32], index: 12, kind: input, shape index: {}]   ;;  %s1437_s13 = inlined_call_operand.vmem [shape: f32[4,1], index: 13, kind: input, shape index: {}]   ;;  %s1438_s14 = inlined_call_operand.vmem [shape: f32[4,1], index: 14, kind: input, shape index: {}]   ;;  %s1439_s15 = inlined_call_operand.hbm [shape: f32[4,128], index: 15, kind: output, shape index: {}]  }
   0x1   :  { %v1240_v0 = vld [vmem:[%s1425_s1] sm:$0x3]  ;;  %v52_v2 = vld [vmem:[%s1426_s2 + $0x8] sm:$0xff]  ;;  %v53_v3 = vld [vmem:[%s1426_s2 + $0x10] sm:$0xff] }
   0x2   :  { %v51_v1 = vld [vmem:[%s1426_s2] sm:$0xff]  ;;  %965 = vmatprep.subr.msk.mxu0 %vm116_vm0, %v1240_v0  ;;  %v54_v5 = vld [vmem:[%s1426_s2 + $0x18] sm:$0xff] }
   0x3   :  { %967 = vmatprep.mubr.msk.f32.mxu0 %vm91_vm1, %v51_v1  ;;  %v1257_v4 = vld [vmem:[%s1424_s0] sm:$0xf]  ;;  %966 = vmatpush3.msk.msra.mxu0 %vm116_vm0, %v1240_v0 }
   0x4   :  { %968 = vmatmul.mubr.msk.f32.vlgmr.msra.gmra.mrb[0].mxu0 %vm91_vm1, %v52_v2  ;;  %979 = vmatprep.subr.msk.mxu0 %vm116_vm0, %v1257_v4 }
   0x5   :  { %970 = vmatprep.mubr.msk.f32.mxu0 %vm91_vm1, %v53_v3  ;;  %980 = vmatpush3.msk.msra.mxu0 %vm116_vm0, %v1257_v4 }
   0x6   :  { %20 = vsyncpa [#allocation3], 0  ;;  %v55_v6 = vld [vmem:[%s1426_s2 + $0x20] sm:$0xff]  ;;  %v56_v7 = vld [vmem:[%s1426_s2 + $0x28] sm:$0xff]  ;;  %vm353_vm2 = vcmask 261120   ;;  %v1152_v17 = vmov 0   ;;  %v538_v63 = vlaneseq }
   0x7   :  { %v57_v8 = vld [vmem:[%s1426_s2 + $0x30] sm:$0xff]  ;;  %v58_v9 = vld [vmem:[%s1426_s2 + $0x38] sm:$0xff]  ;;  %v59_v10 = vld [vmem:[%s1427_s3] sm:$0xff]  ;;  %1086 = vset.pattern.permute.xlu0 %v1152_v17  ;;  %1087 = vset.pattern.permute.xlu1 %v1152_v17  ;;  %v1153_v41 = vmov 0.0|0.0   ;;  %vm1154_vm3 = vmmov 0   ;;  %v1155_v42 = vmov 0.0  }
   0x8   :  { %971 = vmatmul.mubr.msk.f32.gmra.mrb[2].mxu0 %vm91_vm1, %v54_v5  ;;  %v60_v11 = vld [vmem:[%s1427_s3 + $0x8] sm:$0xff]  ;;  %v61_v12 = vld [vmem:[%s1427_s3 + $0x10] sm:$0xff]  ;;  %v62_v13 = vld [vmem:[%s1427_s3 + $0x18] sm:$0xff]  ;;  %v539_v1 = vshrl.u32 %v538_v63, 7  ;;  %s1156_s28 = smov [#allocation2]  }
   0x9   :  { %973 = vmatprep.mubr.msk.f32.mxu0 %vm91_vm1, %v55_v6  ;;  %v63_v14 = vld [vmem:[%s1428_s4] sm:$0xff]  ;;  %v69_v16 = vld [vmem:[%s1429_s5 + $0x10] sm:$0xff]  ;;  %v68_v18 = vld [vmem:[%s1429_s5 + $0x8] sm:$0xff]  ;;  %s883_s0 = sshll.u32 %s1156_s28, 4  ;;  %s884_s0 = int_to_ptr.vmem [resolvable:$true] %s883_s0 }
   0xa   :  { %995 = vmatprep.mubr.msk.f32.mxu1 %vm353_vm2, %v63_v14  ;;  %v67_v15 = vld [vmem:[%s1429_s5] sm:$0xff]  ;;  %345 = vperm.xlu1 %1087, %v69_v16   ;;  %v70_v19 = vld [vmem:[%s1429_s5 + $0x18] sm:$0xff]  ;;  %v83_v23 = vld [vmem:[%s1435_s11 + $0x8] sm:$0xff]  ;;  %v540_v2 = vsub.s32 0, %v539_v1  ;;  %p1133_p1 = scmp.lt.s32.totalorder %s884_s0, %s884_s0 }
   0xb   :  { %335 = vperm.xlu0 %1086, %v67_v15   ;;  %v73_v20 = vld [vmem:[%s1432_s8] sm:$0xf]  ;;  %v84_v24 = vld [vmem:[%s1435_s11 + $0x10] sm:$0xff]  ;;  %v85_v25 = vld [vmem:[%s1435_s11 + $0x18] sm:$0xff] }
   0xc   :  { %974 = vmatmul.mubr.msk.f32.gmra.mrb[4].mxu0 %vm91_vm1, %v56_v7  ;;  %v72_v21 = vld [vmem:[%s1431_s7] sm:$0xf]  ;;  %v64_v38 = vld [vmem:[%s1428_s4 + $0x8] sm:$0xff]  ;;  %v65_v39 = vld [vmem:[%s1428_s4 + $0x10] sm:$0xff]  ;;  %v1368_v3 = vrot.slane %v1240_v0, %v540_v2 }
   0xd   :  { %976 = vmatprep.mubr.msk.f32.mxu0 %vm91_vm1, %v57_v8  ;;  %v82_v22 = vld [vmem:[%s1435_s11] sm:$0xff]  ;;  %v66_v40 = vld [vmem:[%s1428_s4 + $0x18] sm:$0xff]  ;;  %v75_v0 = vld [vmem:[%s1433_s9 + $0x8] sm:$0xff] }
   0xe   :  { %350 = vperm.xlu1 %1087, %v70_v19   ;;  %v88_v26 = vld [vmem:[%s1438_s14] sm:$0xf]  ;;  %v76_v19 = vld [vmem:[%s1433_s9 + $0x10] sm:$0xff] }
   0xf   :  { %340 = vperm.xlu0 %1086, %v68_v18   ;;  %v87_v27 = vld [vmem:[%s1437_s13] sm:$0xf] }
  0x10   :  { %977 = vmatmul.mubr.msk.f32.gmra.mrb[6].mxu0 %vm91_vm1, %v58_v9  ;;  %v71_v61 = vld [vmem:[%s1430_s6] sm:$0xf] }
  0x11   :  { %981 = vmatprep.mubr.msk.f32.mxu0 %vm91_vm1, %v59_v10  ;;  %v74_v62 = vld [vmem:[%s1433_s9] sm:$0xff] }
  0x12   :  { %457 = vperm.xlu1 %1087, %v72_v21   ;;  %v78_v21 = vld [vmem:[%s1434_s10] sm:$0xff] }
  0x13   :  { %535 = vperm.xlu0 %1086, %v73_v20   ;;  %v77_v20 = vld [vmem:[%s1433_s9 + $0x18] sm:$0xff] }
  0x14   :  { %982 = vmatmul.mubr.msk.f32.vlgmr.msra.gmra.mrb[0].mxu0 %vm91_vm1, %v60_v11 }
  0x15   :  { %984 = vmatprep.mubr.msk.f32.mxu0 %vm91_vm1, %v61_v12 }
  0x16   :  { %668 = vperm.xlu1 %1087, %v83_v23  }
  0x17   :  { %663 = vperm.xlu0 %1086, %v82_v22  }
  0x18   :  { %985 = vmatmul.mubr.msk.f32.gmra.mrb[2].mxu0 %vm91_vm1, %v62_v13 }
  0x19   :  { %1014 = vmatprep.mubr.msk.f32.mxu0 %vm91_vm1, %v74_v62 }
  0x1a   :  { %678 = vperm.xlu1 %1087, %v85_v25  }
  0x1b   :  { %673 = vperm.xlu0 %1086, %v84_v24  }
  0x1e   :  { %784 = vperm.xlu1 %1087, %v87_v27  }
  0x1f   :  { %862 = vperm.xlu0 %1086, %v88_v26  }
  0x89   :  { %v346_v44 = vpop.permute.xlu1 %345 }
  0x8a   :  { %v336_v43 = vpop.permute.xlu0 %335 }
  0x8d   :  { %v351_v50 = vpop.permute.xlu1 %350 }
  0x8e   :  { %v341_v45 = vpop.permute.xlu0 %340 }
  0x91   :  { %v458_v7 = vpop.permute.xlu1 %457 }
  0x92   :  { %v536_v5 = vpop.permute.xlu0 %535 }
  0x93   :  { %v542_v6 = vmul.f32 %v1368_v3, %v536_v5 }
  0xe7   :  { %v983_v28 = vpop.f32.mrb[0].mxu0 }
  0xe8   :  { %1088 = vtanh.f32 %v983_v28  ;;  %v306_v29 = vpop.f32.mrb[1].mxu0 }
  0xe9   :  { %1090 = vtanh.f32 %v306_v29 }
  0xeb   :  { %v986_v30 = vpop.f32.mrb[2].mxu0 }
  0xec   :  { %1092 = vtanh.f32 %v986_v30  ;;  %v316_v31 = vpop.f32.mrb[3].mxu0 }
  0xed   :  { %1094 = vtanh.f32 %v316_v31 }
  0xf2   :  { %v1089_v32 = vpop.eup %1088 }
  0xf3   :  { %v1091_v33 = vpop.eup %1090 }
  0xf4   :  { %v1045_v34 = vpack.c.bf16 %v1089_v32, %v1091_v33  ;;  %v79_v32 = vld [vmem:[%s1434_s10 + $0x8] sm:$0xff]  ;;  %v80_v33 = vld [vmem:[%s1434_s10 + $0x10] sm:$0xff] }
  0xf6   :  { %v1093_v35 = vpop.eup %1092  ;;  %1046 = vmatprep.subr.bf16.mxu1 %v1045_v34 }
  0xf7   :  { %v1095_v36 = vpop.eup %1094  ;;  %1048 = vmatpush3.bf16.msra.mxu1 %v1045_v34  ;;  %v81_v34 = vld [vmem:[%s1434_s10 + $0x18] sm:$0xff] }
  0xf8   :  { %v1049_v37 = vpack.c.bf16 %v1093_v35, %v1095_v36  ;;  %v669_v35 = vpop.permute.xlu1 %668  ;;  %v664_v36 = vpop.permute.xlu0 %663 }
  0xfa   :  { %1050 = vmatprep.subr.bf16.mxu1 %v1049_v37 }
  0xfb   :  { %1052 = vmatpush3.bf16.msra.mxu1 %v1049_v37 }
  0xfc   :  { %1053 = vmatprep.subr.bf16.mxu1 %v1153_v41 }
  0xfe   :  { %996 = vmatmul.mubr.msk.f32.vlgmr.msra.gmra.mrb[0].mxu1 %vm353_vm2, %v64_v38 }
  0xff   :  { %998 = vmatprep.mubr.msk.f32.mxu1 %vm353_vm2, %v65_v39 }
 0x102   :  { %999 = vmatmul.mubr.msk.f32.gmra.mrb[2].mxu1 %vm353_vm2, %v66_v40 }
 0x103   :  { %1009 = vmatprep.mubr.msk.f32.mxu1 %vm1154_vm3, %v1155_v42 }
 0x1d1   :  { %v997_v46 = vpop.f32.mrb[0].mxu1 }
 0x1d2   :  { %v438_v47 = vadd.f32 %v997_v46, %v341_v45  ;;  %v432_v48 = vpop.f32.mrb[1].mxu1  ;;  %v674_v45 = vpop.permute.xlu0 %673 }
 0x1d3   :  { %v433_v49 = vadd.f32 %v432_v48, %v336_v43  ;;  %v679_v43 = vpop.permute.xlu1 %678 }
 0x1d4   :  { %1096 = vtanh.f32 %v438_v47 }
 0x1d5   :  { %1098 = vtanh.f32 %v433_v49  ;;  %v1000_v51 = vpop.f32.mrb[2].mxu1 }
 0x1d6   :  { %v448_v52 = vadd.f32 %v1000_v51, %v351_v50  ;;  %v442_v53 = vpop.f32.mrb[3].mxu1 }
 0x1d7   :  { %v443_v54 = vadd.f32 %v442_v53, %v346_v44 }
 0x1d8   :  { %1100 = vtanh.f32 %v448_v52 }
 0x1d9   :  { %1102 = vtanh.f32 %v443_v54  ;;  %v86_v54 = vld [vmem:[%s1436_s12] sm:$0xf]  ;;  %s1128_s12 = scalar_lea.vmem %s884_s0, 64 }
 0x1da   :  { %1104 = vtanh.f32 %v542_v6  ;;  %p1129_p0 = scmp.ne.s32.totalorder %s884_s0, %s1128_s12  ;;  %p1134_p2 = scmp.lt.s32.totalorder %s1128_s12, %s1128_s12 }
 0x1dc   :  { %p1135_p3 = por %p1134_p2, %p1133_p1 }
 0x1de   :  { %v1097_v55 = vpop.eup %1096  ;;  %p1136_p4 = pnand %p1135_p3, %p1129_p0 }
 0x1df   :  { %v1099_v56 = vpop.eup %1098 }
 0x1e0   :  { %v1054_v57 = vpack.c.bf16 %v1097_v55, %v1099_v56  ;;  %v863_v55 = vpop.permute.xlu0 %862 }
 0x1e1   :  { %v865_v56 = vmul.f32 %v863_v55, %v1368_v3 }
 0x1e2   :  { %v1101_v58 = vpop.eup %1100  ;;  %1055 = vmatpush3.bf16.msra.mxu1 %v1054_v57  ;;  %v785_v57 = vpop.permute.xlu1 %784 }
 0x1e3   :  { %v1103_v59 = vpop.eup %1102  ;;  %1056 = vmatprep.subr.bf16.mxu1 %v1153_v41 }
 0x1e4   :  { %v1057_v60 = vpack.c.bf16 %v1101_v58, %v1103_v59  ;;  %v1105_v11 = vpop.eup %1104 }
 0x1e6   :  { %1058 = vmatpush3.bf16.msra.mxu1 %v1057_v60 }
 0x1e9   :  { %1010 = vmatmul.mubr.msk.f32.vlgmr.msra.gmra.mrb[4].mxu1 %vm353_vm2, %v71_v61 }
 0x1ea   :  { %1028 = vmatprep.mubr.msk.f32.mxu1 %vm353_vm2, %v78_v21 }
 0x2bc   :  { %v529_v8 = vpop.f32.mrb[4].mxu1 }
 0x2bd   :  { %v530_v9 = vadd.f32 %v529_v8, %v458_v7  ;;  %v1011_v10 = vpop.f32.mrb[5].mxu1 }
 0x2bf   :  { %v544_v12 = vmul.f32 %v1105_v11, %v530_v9 }
 0x2c1   :  { %v545_v13 = vmul.f32 1.442695, %v544_v12 }
 0x2c3   :  { %1106 = vpow2.f32 %v545_v13 }
 0x2cd   :  { %v1107_v14 = vpop.eup %1106 }
 0x2ce   :  { %v548_v15 = vrot.slane %v1107_v14, 6 }
 0x2d0   :  { %v550_v16 = vmul.f32 %v548_v15, %v1257_v4 }
 0x2d2   :  { %v551_v17 = vadd.f32 %v550_v16, %v544_v12 }
 0x2d4   :  { %v553_v18 = vrot.slane %v551_v17, 2  ;;  %876 = vst [vmem:[#allocation2] sm:$0xc] %v551_v17 }
 0x2d6   :  { %1012 = vmatprep.subr.msk.mxu0 %vm116_vm0, %v553_v18 }
 0x2d7   :  { %1013 = vmatpush3.msk.msra.mxu0 %vm116_vm0, %v553_v18 }
 0x2d8   :  { %1015 = vmatmul.mubr.msk.f32.vlgmr.msra.gmra.mrb[4].mxu0 %vm91_vm1, %v75_v0 }
 0x2d9   :  { %1017 = vmatprep.mubr.msk.f32.mxu0 %vm91_vm1, %v76_v19 }
 0x2dc   :  { %1018 = vmatmul.mubr.msk.f32.gmra.mrb[6].mxu0 %vm91_vm1, %v77_v20 }
 0x3ab   :  { %v1016_v22 = vpop.f32.mrb[4].mxu0 }
 0x3ac   :  { %1108 = vtanh.f32 %v1016_v22  ;;  %v634_v23 = vpop.f32.mrb[5].mxu0 }
 0x3ad   :  { %1110 = vtanh.f32 %v634_v23 }
 0x3af   :  { %v1019_v24 = vpop.f32.mrb[6].mxu0 }
 0x3b0   :  { %1112 = vtanh.f32 %v1019_v24  ;;  %v644_v25 = vpop.f32.mrb[7].mxu0 }
 0x3b1   :  { %1114 = vtanh.f32 %v644_v25 }
 0x3b6   :  { %v1109_v26 = vpop.eup %1108 }
 0x3b7   :  { %v1111_v27 = vpop.eup %1110 }
 0x3b8   :  { %v1059_v28 = vpack.c.bf16 %v1109_v26, %v1111_v27 }
 0x3ba   :  { %v1113_v29 = vpop.eup %1112  ;;  %1060 = vmatprep.subr.bf16.mxu1 %v1059_v28 }
 0x3bb   :  { %v1115_v30 = vpop.eup %1114  ;;  %1062 = vmatpush3.bf16.msra.mxu1 %v1059_v28 }
 0x3bc   :  { %v1063_v31 = vpack.c.bf16 %v1113_v29, %v1115_v30 }
 0x3be   :  { %1064 = vmatprep.subr.bf16.mxu1 %v1063_v31 }
 0x3bf   :  { %1066 = vmatpush3.bf16.msra.mxu1 %v1063_v31 }
 0x3c0   :  { %1067 = vmatprep.subr.bf16.mxu1 %v1153_v41 }
 0x3c2   :  { %1029 = vmatmul.mubr.msk.f32.vlgmr.msra.gmra.mrb[6].mxu1 %vm353_vm2, %v79_v32 }
 0x3c3   :  { %1031 = vmatprep.mubr.msk.f32.mxu1 %vm353_vm2, %v80_v33 }
 0x3c6   :  { %1032 = vmatmul.mubr.msk.f32.gmra.mrb[8].mxu1 %vm353_vm2, %v81_v34 }
 0x3c7   :  { %1042 = vmatprep.mubr.msk.f32.mxu1 %vm1154_vm3, %v1155_v42 }
 0x495   :  { %v1030_v37 = vpop.f32.mrb[6].mxu1 }
 0x496   :  { %v765_v38 = vadd.f32 %v1030_v37, %v669_v35  ;;  %v759_v39 = vpop.f32.mrb[7].mxu1 }
 0x497   :  { %v760_v40 = vadd.f32 %v759_v39, %v664_v36 }
 0x498   :  { %1116 = vtanh.f32 %v765_v38 }
 0x499   :  { %1118 = vtanh.f32 %v760_v40  ;;  %v1033_v44 = vpop.f32.mrb[8].mxu1 }
 0x49a   :  { %v775_v46 = vadd.f32 %v1033_v44, %v679_v43  ;;  %v769_v47 = vpop.f32.mrb[9].mxu1 }
 0x49b   :  { %v770_v48 = vadd.f32 %v769_v47, %v674_v45 }
 0x49c   :  { %1120 = vtanh.f32 %v775_v46 }
 0x49d   :  { %1122 = vtanh.f32 %v770_v48 }
 0x49e   :  { %1124 = vtanh.f32 %v865_v56 }
 0x4a2   :  { %v1117_v49 = vpop.eup %1116 }
 0x4a3   :  { %v1119_v50 = vpop.eup %1118 }
 0x4a4   :  { %v1068_v51 = vpack.c.bf16 %v1117_v49, %v1119_v50 }
 0x4a6   :  { %v1121_v42 = vpop.eup %1120  ;;  %1069 = vmatpush3.bf16.msra.mxu1 %v1068_v51 }
 0x4a7   :  { %v1123_v52 = vpop.eup %1122  ;;  %1070 = vmatprep.subr.bf16.mxu1 %v1153_v41 }
 0x4a8   :  { %v1071_v53 = vpack.c.bf16 %v1121_v42, %v1123_v52  ;;  %v1125_v61 = vpop.eup %1124 }
 0x4aa   :  { %1072 = vmatpush3.bf16.msra.mxu1 %v1071_v53 }
 0x4ad   :  { %1043 = vmatmul.mubr.msk.f32.vlgmr.msra.gmra.mrb[10].mxu1 %vm353_vm2, %v86_v54 }
 0x580   :  { %v856_v58 = vpop.f32.mrb[10].mxu1 }
 0x581   :  { %v857_v59 = vadd.f32 %v856_v58, %v785_v57  ;;  %v1044_v60 = vpop.f32.mrb[11].mxu1 }
 0x583   :  { %v867_v62 = vmul.f32 %v1125_v61, %v857_v59 }
 0x585   :  { %v868_v63 = vmul.f32 1.442695, %v867_v62  ;;  %v872_v1 = vrot.slane %v867_v62, 2 }
 0x587   :  { %1126 = vpow2.f32 %v868_v63 }
 0x591   :  { %v1127_v41 = vpop.eup %1126 }
 0x592   :  { %v870_v2 = vmul.f32 %v1127_v41, %v1257_v4 }
 0x594   :  { %v874_v5 = vadd.f32 %v872_v1, %v870_v2 }
 0x596   :  { %875 = vst [vmem:[#allocation2] sm:$0x3] %v874_v5 }
 0x597   :  { %1139 = shalt.err (!%p1136_p4)
}
 0x598   :  { %s1140_s13 = scalar_lea.hbm %s1439_s15, 64 }
 0x599   :  { %p1141_p5 = scmp.ne.s32.totalorder %s1439_s15, %s1140_s13  ;;  %p1144_p6 = scmp.lt.u32.totalorder %s1140_s13, %s1439_s15 }
 0x59b   :  { %p1146_p7 = pnand %p1144_p6, %p1141_p5 }
 0x59d   :  { %1149 = shalt.err (!%p1146_p7)
}
 0x59e   :  { %886 = dma.vmem_to_hbm [thread:$0]  %s884_s0, 64, %s1439_s15, [#allocation3]  }
 0x59f   :  { %1150 = dma.done.wait [#allocation3], 64  }
 0x5a0   :  { %1151 = vsyncadd [#allocation3], 4294967232 }
 0x5a1   :  { %890 = vsyncpa [#allocation3], 1 }

</bundles_post_ra>
